<compile_context>
chip_gen: v7x
topology: tpu7x:2x2x1
jax: 0.10.0
libtpu: 0.0.40
codegen_flags: <defaults>
</compile_context>

<pallas_src>
import functools

import jax
import jax.numpy as jnp
from jax.experimental import pallas as pl
from jax.experimental.pallas import tpu as pltpu


# 256-lane alignment fills the 256-wide MXUs on v6e/v7x; v5e's 128^2 MXUs are
# indifferent (only cost is a little extra zero padding for odd H).
_LANE_ALIGN = 256


def _round_up(v: int, m: int) -> int:
    return ((v + m - 1) // m) * m


def _vmem_capacity_bytes() -> int:
    """Physical per-core VMEM (128 MiB on v5e/v6e, 64 MiB per TC on v7x)."""
    try:
        return int(pltpu.get_tpu_info().vmem_capacity_bytes)
    except Exception:
        return 64 << 20          # conservative default (v7x)


# ---------------------------------------------------------------------------
# Kernel bodies
# ---------------------------------------------------------------------------
def _resident_kernel(x_ref, w_ref, b_ref, o_ref, *, cdtype, approximate):
    """Whole (Hp, Hp) weight resident in VMEM; one grid step per row tile.

    x is streamed in its original dtype and cast to `cdtype` only for the MXU
    push, so the residual add stays exact and x is read from HBM exactly once.
    """
    x = x_ref[...]                                           # [tm, Hp]
    y = jnp.dot(x.astype(cdtype), w_ref[...],
                preferred_element_type=jnp.float32)
    y = jax.nn.gelu(y + b_ref[...], approximate=approximate)
    o_ref[...] = (y + x.astype(jnp.float32)).astype(o_ref.dtype)


def _ktiled_kernel(x_ref, res_ref, w_ref, b_ref, o_ref, *maybe_acc,
                   cdtype, approximate, acc_in_out):
    """(m, n, k) tiled contraction for weights too large to keep resident.

    When the output dtype is f32 we accumulate straight into o_ref (its block
    index is constant across k, so it stays VMEM-resident) and skip the
    scratch accumulator entirely.
    """
    k = pl.program_id(2)
    acc = o_ref if acc_in_out else maybe_acc[0]

    @pl.when(k == 0)
    def _():
        acc[...] = jnp.zeros_like(acc)

    acc[...] += jnp.dot(x_ref[...].astype(cdtype), w_ref[...],
                        preferred_element_type=jnp.float32)

    @pl.when(k == pl.num_programs(2) - 1)
    def _():
        y = jax.nn.gelu(acc[...] + b_ref[...], approximate=approximate)
        o_ref[...] = (y + res_ref[...].astype(jnp.float32)).astype(o_ref.dtype)


# ---------------------------------------------------------------------------
# Wrapper
# ---------------------------------------------------------------------------
def residual_add(x, w, b, *, tile_m=512, tile_n=512, tile_k=512,
                 compute_dtype=None, w_resident_bytes=None,
                 x_pipeline_depth=None, approximate_gelu=True):
    """out = gelu(x @ w + b) + x   (ResidualAdd with fn = Linear + GELU).

    x: [B, S, H], w: [H, H], b: [H].
    compute_dtype: optional narrower dtype (e.g. jnp.bfloat16) for the MXU
        streams; accumulation, bias, GELU and the residual add stay f32 and
        the cast is folded into the kernel (x is read from HBM once).
    w_resident_bytes: override for the resident-W threshold (default ~30% of
        physical VMEM, i.e. generation-aware).
    x_pipeline_depth: optional >2 buffering depth for the x stream on the
        resident path (mem-bound small-H shapes).
    """
    B, S, H = x.shape
    M = B * S
    out_dtype = x.dtype
    cdtype = (jnp.dtype(compute_dtype) if compute_dtype is not None
              else jnp.dtype(x.dtype))
    xsz = jnp.dtype(x.dtype).itemsize
    wsz = cdtype.itemsize
    osz = jnp.dtype(out_dtype).itemsize

    Hp = _round_up(H, _LANE_ALIGN)

    vmem_phys = _vmem_capacity_bytes()
    vmem_budget = int(vmem_phys * 0.80)           # working-set target
    vmem_cap = int(vmem_phys * 0.85)              # hard compiler limit
    if w_resident_bytes is None:
        # ~38 MiB on 128 MiB parts (v5e/v6e), ~19 MiB on 64 MiB v7x.
        w_resident_bytes = int(vmem_phys * 0.30)

    # --- pad to lane-dense Hp; weight/bias prepared once in the wrapper -----
    x2 = x.reshape(M, H)
    if Hp != H:
        x2 = jnp.pad(x2, ((0, 0), (0, Hp - H)))
        w_p = jnp.pad(w, ((0, Hp - H), (0, Hp - H)))
        b_p = jnp.pad(b, (0, Hp - H))
    else:
        w_p, b_p = w, b
    w_p = w_p.astype(cdtype)                      # one-time cast (reused nm x)
    b_p = jnp.asarray(b_p, jnp.float32).reshape(1, Hp)
    # NOTE: x keeps its original dtype — any bf16 cast happens inside the
    # kernel, so x HBM traffic is paid once and the residual is exact.

    # --- row tiling ----------------------------------------------------------
    tm = min(max(8, (tile_m // 8) * 8), M)
    # >= 2 parallel m steps so both v7x TensorCores get work at decode-sized M.
    if M >= 16 and pl.cdiv(M, tm) < 2:
        tm = max(8, _round_up(pl.cdiv(M, 2), 8))

    w_bytes = Hp * Hp * wsz
    fixed = w_bytes + Hp * 4
    resident = w_bytes <= w_resident_bytes
    if resident:
        per_row = Hp * (2 * xsz + 2 * osz)
        avail = vmem_budget - fixed
        if avail < 8 * per_row:
            resident = False                      # can't fit even tm=8 rows
        elif avail // per_row < tm:
            tm = max(8, int(avail // per_row) // 8 * 8)

    if resident:
        # ---------------- resident-W fast path (W read from HBM once) -------
        nm = pl.cdiv(M, tm)
        x_spec = pl.BlockSpec((tm, Hp), lambda i: (i, 0))
        need = fixed + tm * Hp * (2 * xsz + 2 * osz)
        # TODO(synk): enable deeper x buffering by default once profiling
        # confirms DMA is exposed on mem-bound (small-H) shapes.
        if x_pipeline_depth and x_pipeline_depth > 2:
            deep_need = fixed + tm * Hp * (x_pipeline_depth * xsz + 2 * osz)
            if deep_need <= vmem_budget:
                x_spec = pl.BlockSpec(
                    (tm, Hp), lambda i: (i, 0),
                    pipeline_mode=pl.Buffered(x_pipeline_depth))
                need = deep_need

        in_specs = [
            x_spec,
            pl.BlockSpec((Hp, Hp), lambda i: (0, 0),
                         pipeline_mode=pl.Buffered(1)),       # W resident
            pl.BlockSpec((1, Hp), lambda i: (0, 0),
                         pipeline_mode=pl.Buffered(1)),       # bias resident
        ]
        out_spec = pl.BlockSpec((tm, Hp), lambda i: (i, 0))
        grid = (nm,)
        scratch = []
        semantics = ("parallel",)
        kernel = functools.partial(_resident_kernel, cdtype=cdtype,
                                   approximate=approximate_gelu)
        args = (x2, w_p, b_p)
    else:
        # ---------------- (m, n, k) tiled fallback ---------------------------
        acc_in_out = jnp.dtype(out_dtype) == jnp.dtype(jnp.float32)

        def _pick(pref):
            align = 256 if pref >= 256 else 128   # 256 fills v6e/v7x MXUs
            t = min(_round_up(pref, align), Hp)
            while Hp % t:
                t -= align
            return max(t, 128)

        tn = _pick(tile_n)
        tk = _pick(tile_k)

        def _need(tm_, tn_, tk_):
            acc_b = 0 if acc_in_out else tm_ * tn_ * 4
            return (2 * tm_ * tk_ * xsz        # x (K slice, double-buffered)
                    + 2 * tm_ * tn_ * xsz      # residual (N slice)
                    + 2 * tk_ * tn_ * wsz      # W slice
                    + 2 * tn_ * 4              # bias slice
                    + 2 * tm_ * tn_ * osz      # out
                    + acc_b)

        while _need(tm, tn, tk) > vmem_budget:
            if tm > 128:
                tm = max(128, ((tm // 2) // 8) * 8)
            elif tn > 256:
                tn //= 2                       # halving preserves Hp % tn == 0
            elif tk > 256:
                tk //= 2
            elif tm > 8:
                tm = max(8, ((tm // 2) // 8) * 8)
            else:
                break

        nm, nn, nk = pl.cdiv(M, tm), Hp // tn, Hp // tk
        need = _need(tm, tn, tk)

        in_specs = [
            pl.BlockSpec((tm, tk), lambda i, j, k: (i, k)),   # x (K slice)
            pl.BlockSpec((tm, tn), lambda i, j, k: (i, j)),   # residual (N slice)
            pl.BlockSpec((tk, tn), lambda i, j, k: (k, j)),   # W slice
            pl.BlockSpec((1, tn), lambda i, j, k: (0, j)),    # bias slice
        ]
        out_spec = pl.BlockSpec((tm, tn), lambda i, j, k: (i, j))
        grid = (nm, nn, nk)
        scratch = [] if acc_in_out else [pltpu.VMEM((tm, tn), jnp.float32)]
        semantics = ("parallel", "parallel", "arbitrary")
        kernel = functools.partial(_ktiled_kernel, cdtype=cdtype,
                                   approximate=approximate_gelu,
                                   acc_in_out=acc_in_out)
        args = (x2, x2, w_p, b_p)

    vmem_limit = min(max(int(need * 1.5) + (2 << 20), 16 << 20), vmem_cap)

    cost = pl.CostEstimate(
        flops=2 * M * Hp * Hp,
        transcendentals=M * Hp,                       # one tanh per output elem
        bytes_accessed=(M * Hp * xsz + Hp * Hp * wsz + Hp * 4 + M * Hp * osz),
    )

    out = pl.pallas_call(
        kernel,
        out_shape=jax.ShapeDtypeStruct((M, Hp), out_dtype),
        grid_spec=pltpu.PrefetchScalarGridSpec(
            num_scalar_prefetch=0,
            grid=grid,
            in_specs=in_specs,
            out_specs=out_spec,
            scratch_shapes=scratch,
        ),
        compiler_params=pltpu.CompilerParams(
            dimension_semantics=semantics,
            vmem_limit_bytes=vmem_limit,
        ),
        cost_estimate=cost,
    )(*args)

    if Hp != H:
        out = out[:, :H]
    return out.reshape(B, S, H)


if __name__ == "__main__":
    key = jax.random.PRNGKey(0)
    kx, kw, kb = jax.random.split(key, 3)

    # Case 1: spec-sized shapes (H=32 padded to 256 lanes inside the wrapper);
    # exercises the resident-weight fast path.
    B, S, H = 2, 8, 32
    x = jax.random.normal(kx, (B, S, H), dtype=jnp.float32)
    w = jax.random.normal(kw, (H, H), dtype=jnp.float32) * 0.02
    b = jax.random.normal(kb, (H,), dtype=jnp.float32) * 0.02

    out = jax.block_until_ready(residual_add(x, w, b))
    ref = jax.nn.gelu(x @ w + b) + x
    assert out.shape == x.shape and out.dtype == x.dtype
    assert jnp.allclose(out, ref, atol=1e-5, rtol=1e-5), "resident path mismatch"

    # Case 2: force the (m, n, k) tiled path (H=512, tn=tk=256 -> 2x2x2 grid,
    # accumulation directly in the VMEM-resident f32 output block).
    H2 = 512
    x2 = jax.random.normal(kx, (1, 16, H2), dtype=jnp.float32)
    w2 = jax.random.normal(kw, (H2, H2), dtype=jnp.float32) * 0.02
    b2 = jax.random.normal(kb, (H2,), dtype=jnp.float32) * 0.02
    out2 = jax.block_until_ready(
        residual_add(x2, w2, b2, tile_n=256, tile_k=256, w_resident_bytes=0))
    ref2 = jax.nn.gelu(x2 @ w2 + b2) + x2
    assert out2.shape == x2.shape and out2.dtype == x2.dtype
    assert jnp.allclose(out2, ref2, atol=2e-3, rtol=2e-3), "k-tiled path mismatch"

    # Case 3: bf16 MXU stream with exact f32 residual (cast folded into kernel).
    out3 = jax.block_until_ready(residual_add(x, w, b, compute_dtype=jnp.bfloat16))
    xb = x.astype(jnp.bfloat16).astype(jnp.float32)
    wb = w.astype(jnp.bfloat16).astype(jnp.float32)
    ref3 = jax.nn.gelu(xb @ wb + b) + x           # residual is the exact f32 x
    assert out3.dtype == x.dtype
    assert jnp.allclose(out3, ref3, atol=1e-2, rtol=1e-2), "bf16 path mismatch"

    print("KERNEL_OK")
</pallas_src>

<mosaic_0001>
module attributes {stable_mosaic.version = 11 : i64} {
  func.func @_resident_kernel(%arg0: i32, %arg1: memref<8x256xf32, #tpu.memory_space<vmem>>, %arg2: memref<256x256xf32, #tpu.memory_space<vmem>>, %arg3: memref<1x256xf32, #tpu.memory_space<vmem>>, %arg4: memref<8x256xf32, #tpu.memory_space<vmem>>) attributes {dimension_semantics = [#tpu.dimension_semantics<parallel>], iteration_bounds = array<i64: 2>, scalar_prefetch = 0 : i64, scratch_operands = 0 : i64, tpu.core_type = #tpu.core_type<tc>, window_params = [{transform_indices = @transform_0, window_bounds = array<i64: 8, 256>}, {pipeline_mode = #tpu.pipeline_mode<synchronous>, transform_indices = @transform_1, window_bounds = array<i64: 256, 256>}, {pipeline_mode = #tpu.pipeline_mode<synchronous>, transform_indices = @transform_2, window_bounds = array<i64: 1, 256>}, {transform_indices = @transform_3, window_bounds = array<i64: 8, 256>}]} {
    %c0 = arith.constant 0 : index
    %c0_0 = arith.constant 0 : index
    %0 = vector.load %arg1[%c0, %c0_0] : memref<8x256xf32, #tpu.memory_space<vmem>>, vector<8x256xf32>
    %c0_1 = arith.constant 0 : index
    %c0_2 = arith.constant 0 : index
    %1 = vector.load %arg2[%c0_1, %c0_2] : memref<256x256xf32, #tpu.memory_space<vmem>>, vector<256x256xf32>
    %cst = arith.constant dense<0.000000e+00> : vector<8x256xf32>
    %2 = tpu.matmul %0, %1, %cst {dimension_numbers = #tpu.dot_dimension_numbers<[1], [0], [0], [1], [0, 0, 1, 1], [], []>} : vector<8x256xf32>, vector<256x256xf32>, vector<8x256xf32> -> vector<8x256xf32>
    %c0_3 = arith.constant 0 : index
    %c0_4 = arith.constant 0 : index
    %3 = vector.load %arg3[%c0_3, %c0_4] : memref<1x256xf32, #tpu.memory_space<vmem>>, vector<1x256xf32>
    %4 = vector.broadcast %3 : vector<1x256xf32> to vector<8x256xf32>
    %5 = arith.addf %2, %4 : vector<8x256xf32>
    %6 = arith.mulf %5, %5 : vector<8x256xf32>
    %7 = arith.mulf %5, %6 : vector<8x256xf32>
    %cst_5 = arith.constant 4.471500e-02 : f32
    %8 = vector.broadcast %cst_5 : f32 to vector<8x256xf32>
    %9 = arith.mulf %8, %7 : vector<8x256xf32>
    %10 = arith.addf %5, %9 : vector<8x256xf32>
    %cst_6 = arith.constant 0.797884583 : f32
    %11 = vector.broadcast %cst_6 : f32 to vector<8x256xf32>
    %12 = arith.mulf %11, %10 : vector<8x256xf32>
    %13 = math.tanh %12 : vector<8x256xf32>
    %cst_7 = arith.constant 1.000000e+00 : f32
    %14 = vector.broadcast %cst_7 : f32 to vector<8x256xf32>
    %15 = arith.addf %14, %13 : vector<8x256xf32>
    %cst_8 = arith.constant 5.000000e-01 : f32
    %16 = vector.broadcast %cst_8 : f32 to vector<8x256xf32>
    %17 = arith.mulf %16, %15 : vector<8x256xf32>
    %18 = arith.mulf %5, %17 : vector<8x256xf32>
    %19 = arith.addf %18, %0 : vector<8x256xf32>
    %c0_9 = arith.constant 0 : index
    %c0_10 = arith.constant 0 : index
    %20 = vector.load %arg4[%c0_9, %c0_10] : memref<8x256xf32, #tpu.memory_space<vmem>>, vector<8x256xf32>
    tpu.vector_store %arg4[%c0_9, %c0_10], %19 {strides = array<i32>} : memref<8x256xf32, #tpu.memory_space<vmem>>, vector<8x256xf32>,
    return
  }
  func.func @transform_0(%arg0: i32) -> (i32, i32) {
    %c0_i32 = arith.constant 0 : i32
    %c0_i32_0 = arith.constant 0 : i32
    return %arg0, %c0_i32 : i32, i32
  }
  func.func @transform_1(%arg0: i32) -> (i32, i32) {
    %c0_i32 = arith.constant 0 : i32
    %c0_i32_0 = arith.constant 0 : i32
    %c0_i32_1 = arith.constant 0 : i32
    return %c0_i32, %c0_i32_0 : i32, i32
  }
  func.func @transform_2(%arg0: i32) -> (i32, i32) {
    %c0_i32 = arith.constant 0 : i32
    %c0_i32_0 = arith.constant 0 : i32
    %c0_i32_1 = arith.constant 0 : i32
    return %c0_i32, %c0_i32_0 : i32, i32
  }
  func.func @transform_3(%arg0: i32) -> (i32, i32) {
    %c0_i32 = arith.constant 0 : i32
    %c0_i32_0 = arith.constant 0 : i32
    return %arg0, %c0_i32 : i32, i32
  }
}

</mosaic_0001>

<bundles_post_ra>
// kernel: tpu_custom_call.1
= control target key start
LH: loop header
LB: loop body
LE: loop exit
PB: predicated region body
PF: predicated region fallthrough
CT: control target
= control target key end

     0   :  { %8 = vsyncpa [#allocation3], 0  ;;  %s979_s0 = inlined_call_operand.hbm [shape: f32[16,256], index: 0, kind: input, shape index: {}]   ;;  %s980_s1 = inlined_call_operand.hbm [shape: f32[256,256], index: 1, kind: input, shape index: {}]   ;;  %s981_s2 = inlined_call_operand.vmem [shape: f32[1,256], index: 2, kind: input, shape index: {}]   ;;  %s982_s3 = inlined_call_operand.hbm [shape: f32[16,256], index: 3, kind: output, shape index: {}]  }
   0x1   :  { %10 = vsyncpa [#allocation3 + $0x1], 0 }
   0x2   :  { %11 = vsyncpa [#allocation6], 0 }
   0x3   :  { %12 = vsyncpa [#allocation4], 0 }
   0x4   :  { %14 = vsyncpa [#allocation4 + $0x1], 0  ;;  %s768_s12 = smov 0   ;;  %s770_s13 = smov 0  }
   0x5   :  { %s772_s14 = smov 0   ;;  %s774_s15 = smov 0  }
   0x6 LB: > { %s789_s16 = sadd.s32 4294967295, %s741_s15   ;;  %s468_s17 = sadd.s32 4294967294, %s741_s15   ;;  %s741_s15 = sphi %s774_s15, %s1002_s15   ;;  %s737_s14 = sphi %s772_s14, %s1001_s14   ;;  %s733_s13 = sphi %s770_s13, %s1000_s13   ;;  %s729_s12 = sphi %s768_s12, %s999_s12  }
   0x7   : > { %p40_p0 = scmp.ne.s32.totalorder %s733_s13, %s729_s12  ;;  %p983_p1 = scmp.eq.s32.totalorder %s789_s16, 0 }
   0x8   : > { %p112_p3 = scmp.eq.s32.totalorder %s468_s17, 1  ;;  %p469_p5 = scmp.ge.s32.totalorder %s741_s15, 1 }
   0x9   : > { %p798_p4 = por %p983_p1, %p40_p0  ;;  %p119_p7 = scmp.lt.s32.totalorder %s741_s15, 3 }
   0xa   : > { %p803_p6 = por %p112_p3, %p40_p0  ;;  %s743_s21 = smov [#allocation5]  }
   0xb   : > { %s986_s18 = scalar_select %p798_p4, 1, 0 }
   0xc   : > { %s987_s19 = scalar_select %p803_p6, 1, 0 }
   0xd   : > { %p808_p8 = pnand %p469_p5, %p119_p7  ;;  %s131_s22 = sshll.u32 %s743_s21, 4  ;;  %s812_s22 = int_to_ptr.vmem [resolvable:$true] %s131_s22 }
   0xe   : > { %s824_s24 = sadd.s32 1, %s741_s15   ;;  %s27_s25 = sadd.s32 1, %s737_s14 }
   0xf   : > { %s988_s20 = scalar_select %p808_p8, 1, 0 }
  0x10   : > { %p558_p9 = pneg %p808_p8  ;;  %s24_s26 = ssub.s32 %s741_s15, %s824_s24 }
  0x11   : > { %s613_s29 = scalar_lea.hbm %s980_s1, 8192 }
  0x12   : > { %p819_p11 = pnand %p558_p9, %p983_p1  ;;  %p614_p12 = scmp.ne.s32.totalorder %s980_s1, %s613_s29 }
  0x13   : > { %p620_p5 = scmp.lt.u32.totalorder %s613_s29, %s980_s1 }
  0x14   : > { %p615_p13 = pneg %p819_p11 }
  0x16   : > { %p616_p0 = pnand %p615_p13, %p614_p12 }
  0x18   : > { %p617_p3 = pneg %p616_p0 }
  0x1a   : > { %p622_p7 = pnand %p620_p5, %p617_p3 }
  0x1c   : > { %625 = shalt.err (!%p622_p7)
}
  0x1d   : > { %s626_s7 = scalar_lea.vmem %s812_s22, 8192  ;;  %p634_p2 = scmp.lt.s32.totalorder %s812_s22, %s812_s22 }
  0x1e   : > { %p627_p9 = scmp.ne.s32.totalorder %s812_s22, %s626_s7  ;;  %p635_p6 = scmp.lt.s32.totalorder %s626_s7, %s626_s7 }
  0x20   : > { %p629_p10 = pnand %p627_p9, %p615_p13  ;;  %p636_p4 = por %p635_p6, %p634_p2 }
  0x22   : > { %p630_p1 = pneg %p629_p10 }
  0x24   : > { %p637_p8 = pnand %p636_p4, %p630_p1 }
  0x26   : > { %640 = shalt.err (!%p637_p8)
}
  0x27   : > { %s744_s8 = smov 256   ;;  %s745_s9 = smov 16  }
  0x28   : > { %561 = dma.hbm_to_vmem [thread:$0]  (!%p819_p11), %s980_s1, 8192, %s812_s22, [#allocation6], %s744_s8, %s744_s8, %s745_s9  }
  0x29   : > { %p25_p2 = scmp.eq.s32.totalorder %s24_s26, 0  ;;  %p34_p1 = scmp.ne.s32.totalorder %s737_s14, %s733_s13 }
  0x2a   : > { %p35_p4 = scmp.eq.s32.totalorder %s741_s15, 0  ;;  %p571_p6 = scmp.lt.s32.totalorder %s741_s15, 2 }
  0x2b   : > { %s855_s17 = scalar_select %p25_p2, %s737_s14, %s27_s25  }
  0x2c   : > { %p36_p8 = por %p35_p4, %p34_p1  ;;  %p990_p10 = scmp.eq.s32.totalorder %s789_s16, 1 }
  0x2d   : > { %s148_s27 = sand.u32 1, %s737_s14   ;;  %s484_s28 = sshll.u32 %s741_s15, 8 }
  0x2e   : > { %p859_p12 = por %p990_p10, %p34_p1  ;;  %s472_s29 = sshll.u32 %s148_s27, 4 }
  0x2f   : > { %s868_s4 = scalar_lea.hbm %s979_s0, %s484_s28  ;;  %s152_s22 = scalar_lea.vmem [#allocation2], %s472_s29 }
  0x30   : > { %s160_s25 = sshll.u32 %s152_s22, 4  ;;  %p870_p11 = pnand %p571_p6, %p36_p8  ;;  %s874_s25 = int_to_ptr.vmem [resolvable:$true] %s160_s25 }
  0x31   : > { %s149_s5 = scalar_lea.sflag [#allocation3], %s148_s27  ;;  %s641_s6 = scalar_lea.hbm %s868_s4, 256 }
  0x32   : > { %p642_p13 = scmp.ne.s32.totalorder %s868_s4, %s641_s6  ;;  %p643_p0 = pneg %p870_p11 }
  0x33   : > { %s646_s9 = scalar_lea.hbm %s979_s0, 512  ;;  %p647_p7 = scmp.lt.u32.totalorder %s868_s4, %s979_s0 }
  0x34   : > { %p644_p3 = pnand %p643_p0, %p642_p13  ;;  %p648_p9 = scmp.lt.u32.totalorder %s646_s9, %s641_s6 }
  0x35   : > { %p650_p1 = scmp.lt.u32.totalorder %s641_s6, %s868_s4 }
  0x36   : > { %p645_p5 = pneg %p644_p3  ;;  %p649_p2 = por %p648_p9, %p647_p7 }
  0x38   : > { %p651_p4 = por %p650_p1, %p649_p2 }
  0x3a   : > { %p652_p6 = pnand %p651_p4, %p645_p5 }
  0x3c   : > { %655 = shalt.err (!%p652_p6)
}
  0x3d   : > { %s656_s27 = scalar_lea.vmem %s874_s25, 256  ;;  %s746_s28 = smov [#allocation2]  }
  0x3e   : > { %p657_p8 = scmp.ne.s32.totalorder %s874_s25, %s656_s27  ;;  %s661_s29 = sshll.u32 %s746_s28, 4  ;;  %s662_s29 = int_to_ptr.vmem [resolvable:$false] %s661_s29 }
  0x3f   : > { %s663_s23 = scalar_lea.vmem %s662_s29, 512  ;;  %p664_p3 = scmp.lt.s32.totalorder %s874_s25, %s662_s29 }
  0x40   : > { %p659_p10 = pnand %p657_p8, %p643_p0  ;;  %p665_p7 = scmp.lt.s32.totalorder %s663_s23, %s656_s27 }
  0x42   : > { %p660_p13 = pneg %p659_p10  ;;  %p666_p9 = por %p665_p7, %p664_p3 }
  0x44   : > { %p667_p2 = pnand %p666_p9, %p660_p13 }
  0x46   : > { %670 = shalt.err (!%p667_p2)
}
  0x47   : > { %565 = dma.hbm_to_vmem [thread:$0]  (!%p870_p11), %s868_s4, 256, %s874_s25, %s149_s5  }
  0x48   : > { %p993_p5 = scmp.ne.s32.totalorder %s988_s20, 0 }
  0x49   : > { %s904_s30 = sand.u32 (!%p993_p5), 1, %s733_s13   ;;  %p994_p0 = scmp.ne.s32.totalorder (!%p993_p5), %s986_s18, 0 }
  0x4a   : > { %169 = sbr.rel (%p993_p5) target bundleno = 410 (0x19a), region = 32  ;;  %s476_s22 = sshll.u32 (!%p993_p5), %s904_s30, 4 }
  0x4b   : > { %s172_s6 = scalar_lea.sflag (!%p993_p5), [#allocation3], %s904_s30  ;;  %s910_s7 = scalar_lea.vmem (!%p993_p5), [#allocation2], %s476_s22 }
  0x51   : > { %716 = dma.done.wait (%p994_p0), %s172_s6, 256  }
  0x52   : > { %718 = vsyncadd (%p994_p0), %s172_s6, 4294967040  ;;  %p995_p11 = scmp.eq.s32.totalorder %s789_s16, 0 }
  0x54   : > { %720 = dma.done.wait (%p995_p11), [#allocation6], 8192   ;;  %p996_p1 = pmov %p995_p11 }
  0x55   : > { %v205_v0 = vld [vmem:[#allocation5 + $0x8] sm:$0xff]  ;;  %v207_v1 = vld [vmem:[#allocation5 + $0x18] sm:$0xff]  ;;  %v204_v2 = vld [vmem:[#allocation5] sm:$0xff]  ;;  %s485_s4 = sshll.u32 %s789_s16, 8  ;;  %s201_s25 = scalar_lea.vmem [#allocation7], %s476_s22 }
  0x56   : > { %722 = vsyncadd (%p996_p1), [#allocation6], 4294959104  ;;  %v486_v3 = vpack.c.bf16 %v207_v1, %v205_v0  ;;  %v206_v4 = vld [vmem:[#allocation5 + $0x10] sm:$0xff]  ;;  %v209_v5 = vld [vmem:[#allocation5 + $0x28] sm:$0xff]  ;;  %s388_s26 = sshll.u32 %s201_s25, 4  ;;  %s935_s9 = scalar_lea.hbm %s982_s3, %s485_s4  ;;  %s937_s26 = int_to_ptr.vmem [resolvable:$true] %s388_s26 }
  0x57   : > { %v211_v6 = vld [vmem:[#allocation5 + $0x38] sm:$0xff]  ;;  %v488_v7 = vpack.c.bf16 %v206_v4, %v204_v2  ;;  %v208_v9 = vld [vmem:[#allocation5 + $0x20] sm:$0xff]  ;;  %v210_v10 = vld [vmem:[#allocation5 + $0x30] sm:$0xff]  ;;  %s374_s16 = scalar_lea.sflag [#allocation4], %s904_s30  ;;  %s671_s10 = scalar_lea.vmem %s937_s26, 256 }
  0x58   : > { %v490_v8 = vpack.c.bf16 %v211_v6, %v209_v5  ;;  %v213_v11 = vld [vmem:[#allocation5 + $0x48] sm:$0xff]  ;;  %487 = vmatprep.subr.bf16.mxu0 %v486_v3  ;;  %v215_v12 = vld [vmem:[#allocation5 + $0x58] sm:$0xff]  ;;  %v492_v13 = vpack.c.bf16 %v210_v10, %v208_v9  ;;  %v212_v15 = vld [vmem:[#allocation5 + $0x40] sm:$0xff]  ;;  %p672_p4 = scmp.ne.s32.totalorder %s937_s26, %s671_s10  ;;  %s747_s11 = smov [#allocation7]  }
  0x59   : > { %489 = vmatpush1.bf16.msra.mxu0 %v488_v7  ;;  %v494_v14 = vpack.c.bf16 %v215_v12, %v213_v11  ;;  %v214_v16 = vld [vmem:[#allocation5 + $0x50] sm:$0xff]  ;;  %v217_v17 = vld [vmem:[#allocation5 + $0x68] sm:$0xff]  ;;  %v219_v18 = vld [vmem:[#allocation5 + $0x78] sm:$0xff]  ;;  %s675_s27 = sshll.u32 %s747_s11, 4  ;;  %s676_s27 = int_to_ptr.vmem [resolvable:$false] %s675_s27 }
  0x5a   : > { %491 = vmatprep.subr.bf16.mxu0 %v490_v8  ;;  %v496_v19 = vpack.c.bf16 %v214_v16, %v212_v15  ;;  %v498_v20 = vpack.c.bf16 %v219_v18, %v217_v17  ;;  %v216_v21 = vld [vmem:[#allocation5 + $0x60] sm:$0xff]  ;;  %v218_v22 = vld [vmem:[#allocation5 + $0x70] sm:$0xff]  ;;  %v221_v23 = vld [vmem:[#allocation5 + $0x88] sm:$0xff]  ;;  %p673_p6 = pnand %p672_p4, %p859_p12  ;;  %s677_s28 = scalar_lea.vmem %s676_s27, 512 }
  0x5b   : > { %v223_v24 = vld [vmem:[#allocation5 + $0x98] sm:$0xff]  ;;  %v500_v25 = vpack.c.bf16 %v218_v22, %v216_v21  ;;  %v220_v27 = vld [vmem:[#allocation5 + $0x80] sm:$0xff]  ;;  %v222_v28 = vld [vmem:[#allocation5 + $0x90] sm:$0xff]  ;;  %p678_p10 = scmp.lt.s32.totalorder %s937_s26, %s676_s27  ;;  %p679_p13 = scmp.lt.s32.totalorder %s677_s28, %s671_s10 }
  0x5c   : > { %v502_v26 = vpack.c.bf16 %v223_v24, %v221_v23  ;;  %v225_v29 = vld [vmem:[#allocation5 + $0xa8] sm:$0xff]  ;;  %v227_v30 = vld [vmem:[#allocation5 + $0xb8] sm:$0xff]  ;;  %v504_v31 = vpack.c.bf16 %v222_v28, %v220_v27  ;;  %v224_v33 = vld [vmem:[#allocation5 + $0xa0] sm:$0xff]  ;;  %p674_p8 = pneg %p673_p6 }
  0x5d   : > { %493 = vmatpush1.bf16.msra.mxu0 %v492_v13  ;;  %v506_v32 = vpack.c.bf16 %v227_v30, %v225_v29  ;;  %v226_v34 = vld [vmem:[#allocation5 + $0xb0] sm:$0xff]  ;;  %v229_v35 = vld [vmem:[#allocation5 + $0xc8] sm:$0xff]  ;;  %v231_v36 = vld [vmem:[#allocation5 + $0xd8] sm:$0xff]  ;;  %p680_p3 = por %p679_p13, %p678_p10 }
  0x5e   : > { %495 = vmatprep.subr.bf16.mxu0 %v494_v14  ;;  %v508_v37 = vpack.c.bf16 %v226_v34, %v224_v33  ;;  %v510_v38 = vpack.c.bf16 %v231_v36, %v229_v35  ;;  %v228_v39 = vld [vmem:[#allocation5 + $0xc0] sm:$0xff]  ;;  %v230_v40 = vld [vmem:[#allocation5 + $0xd0] sm:$0xff]  ;;  %v921_v41 = vld [vmem:[%s910_s7 + $0x8] sm:$0xff]  ;;  %v270_v34 = vlaneseq }
  0x5f   : > { %v233_v42 = vld [vmem:[#allocation5 + $0xe8] sm:$0xff]  ;;  %v235_v43 = vld [vmem:[#allocation5 + $0xf8] sm:$0xff]  ;;  %344 = vmatprep.mubr.f32.mxu0 %v921_v41  ;;  %v512_v44 = vpack.c.bf16 %v230_v40, %v228_v39  ;;  %v232_v46 = vld [vmem:[#allocation5 + $0xe0] sm:$0xff]  ;;  %p681_p7 = pnand %p680_p3, %p674_p8 }
  0x60   : > { %v514_v45 = vpack.c.bf16 %v235_v43, %v233_v42  ;;  %v234_v47 = vld [vmem:[#allocation5 + $0xf0] sm:$0xff]  ;;  %v237_v48 = vld [vmem:[#allocation5 + $0x108] sm:$0xff]  ;;  %v239_v49 = vld [vmem:[#allocation5 + $0x118] sm:$0xff]  ;;  %v271_v35 = vshrl.u32 %v270_v34, 7 }
  0x61   : > { %497 = vmatpush1.bf16.msra.mxu0 %v496_v19  ;;  %v516_v50 = vpack.c.bf16 %v234_v47, %v232_v46  ;;  %v518_v51 = vpack.c.bf16 %v239_v49, %v237_v48  ;;  %v236_v52 = vld [vmem:[#allocation5 + $0x100] sm:$0xff]  ;;  %v238_v53 = vld [vmem:[#allocation5 + $0x110] sm:$0xff]  ;;  %v241_v54 = vld [vmem:[#allocation5 + $0x128] sm:$0xff] }
  0x62   : > { %499 = vmatprep.subr.bf16.mxu0 %v498_v20  ;;  %v243_v55 = vld [vmem:[#allocation5 + $0x138] sm:$0xff]  ;;  %v520_v56 = vpack.c.bf16 %v238_v53, %v236_v52  ;;  %v240_v58 = vld [vmem:[#allocation5 + $0x120] sm:$0xff]  ;;  %v242_v59 = vld [vmem:[#allocation5 + $0x130] sm:$0xff]  ;;  %v272_v36 = vsub.s32 0, %v271_v35 }
  0x63   : > { %v522_v57 = vpack.c.bf16 %v243_v55, %v241_v54  ;;  %v245_v60 = vld [vmem:[#allocation5 + $0x148] sm:$0xff]  ;;  %v247_v61 = vld [vmem:[#allocation5 + $0x158] sm:$0xff]  ;;  %v524_v62 = vpack.c.bf16 %v242_v59, %v240_v58  ;;  %v244_v0 = vld [vmem:[#allocation5 + $0x140] sm:$0xff] }
  0x64   : > { %v526_v63 = vpack.c.bf16 %v247_v61, %v245_v60  ;;  %v246_v1 = vld [vmem:[#allocation5 + $0x150] sm:$0xff]  ;;  %v249_v2 = vld [vmem:[#allocation5 + $0x168] sm:$0xff]  ;;  %v251_v3 = vld [vmem:[#allocation5 + $0x178] sm:$0xff] }
  0x65   : > { %501 = vmatpush1.bf16.msra.mxu0 %v500_v25  ;;  %v528_v4 = vpack.c.bf16 %v246_v1, %v244_v0  ;;  %v530_v5 = vpack.c.bf16 %v251_v3, %v249_v2  ;;  %v248_v6 = vld [vmem:[#allocation5 + $0x160] sm:$0xff]  ;;  %v250_v7 = vld [vmem:[#allocation5 + $0x170] sm:$0xff]  ;;  %v253_v8 = vld [vmem:[#allocation5 + $0x188] sm:$0xff] }
  0x66   : > { %503 = vmatprep.subr.bf16.mxu0 %v502_v26  ;;  %v255_v9 = vld [vmem:[#allocation5 + $0x198] sm:$0xff]  ;;  %v532_v10 = vpack.c.bf16 %v250_v7, %v248_v6  ;;  %v252_v12 = vld [vmem:[#allocation5 + $0x180] sm:$0xff]  ;;  %v254_v13 = vld [vmem:[#allocation5 + $0x190] sm:$0xff] }
  0x67   : > { %v534_v11 = vpack.c.bf16 %v255_v9, %v253_v8  ;;  %v257_v14 = vld [vmem:[#allocation5 + $0x1a8] sm:$0xff]  ;;  %v259_v15 = vld [vmem:[#allocation5 + $0x1b8] sm:$0xff]  ;;  %v536_v16 = vpack.c.bf16 %v254_v13, %v252_v12  ;;  %v256_v18 = vld [vmem:[#allocation5 + $0x1a0] sm:$0xff] }
  0x68   : > { %v538_v17 = vpack.c.bf16 %v259_v15, %v257_v14  ;;  %v258_v19 = vld [vmem:[#allocation5 + $0x1b0] sm:$0xff]  ;;  %v261_v20 = vld [vmem:[#allocation5 + $0x1c8] sm:$0xff]  ;;  %v263_v21 = vld [vmem:[#allocation5 + $0x1d8] sm:$0xff] }
  0x69   : > { %505 = vmatpush1.bf16.msra.mxu0 %v504_v31  ;;  %v540_v22 = vpack.c.bf16 %v258_v19, %v256_v18  ;;  %v542_v23 = vpack.c.bf16 %v263_v21, %v261_v20  ;;  %v260_v24 = vld [vmem:[#allocation5 + $0x1c0] sm:$0xff]  ;;  %v262_v25 = vld [vmem:[#allocation5 + $0x1d0] sm:$0xff]  ;;  %v265_v26 = vld [vmem:[#allocation5 + $0x1e8] sm:$0xff] }
  0x6a   : > { %507 = vmatprep.subr.bf16.mxu0 %v506_v32  ;;  %v267_v27 = vld [vmem:[#allocation5 + $0x1f8] sm:$0xff]  ;;  %v544_v28 = vpack.c.bf16 %v262_v25, %v260_v24  ;;  %v264_v30 = vld [vmem:[#allocation5 + $0x1e0] sm:$0xff]  ;;  %v266_v31 = vld [vmem:[#allocation5 + $0x1f0] sm:$0xff] }
  0x6b   : > { %v546_v29 = vpack.c.bf16 %v267_v27, %v265_v26  ;;  %v548_v32 = vpack.c.bf16 %v266_v31, %v264_v30  ;;  %v202_v33 = vld [vmem:[%s910_s7] sm:$0xff] }
  0x6d   : > { %509 = vmatpush1.bf16.msra.mxu0 %v508_v37  ;;  %v268_v37 = vld [vmem:[%s981_s2] sm:$0x3] }
  0x6e   : > { %511 = vmatprep.subr.bf16.mxu0 %v510_v38  ;;  %v276_v38 = vsub.s32 1, %v271_v35  ;;  %v273_v39 = vrot.slane %v268_v37, %v272_v36 }
  0x70   : > { %v277_v40 = vrot.slane %v268_v37, %v276_v38 }
  0x71   : > { %513 = vmatpush1.bf16.msra.mxu0 %v512_v44 }
  0x72   : > { %515 = vmatprep.subr.bf16.mxu0 %v514_v45 }
  0x75   : > { %517 = vmatpush1.bf16.msra.mxu0 %v516_v50 }
  0x76   : > { %519 = vmatprep.subr.bf16.mxu0 %v518_v51 }
  0x79   : > { %521 = vmatpush1.bf16.msra.mxu0 %v520_v56 }
  0x7a   : > { %523 = vmatprep.subr.bf16.mxu0 %v522_v57 }
  0x7d   : > { %525 = vmatpush1.bf16.msra.mxu0 %v524_v62 }
  0x7e   : > { %527 = vmatprep.subr.bf16.mxu0 %v526_v63 }
  0x81   : > { %529 = vmatpush1.bf16.msra.mxu0 %v528_v4 }
  0x82   : > { %531 = vmatprep.subr.bf16.mxu0 %v530_v5 }
  0x85   : > { %533 = vmatpush1.bf16.msra.mxu0 %v532_v10 }
  0x86   : > { %535 = vmatprep.subr.bf16.mxu0 %v534_v11 }
  0x89   : > { %537 = vmatpush1.bf16.msra.mxu0 %v536_v16 }
  0x8a   : > { %539 = vmatprep.subr.bf16.mxu0 %v538_v17 }
  0x8d   : > { %541 = vmatpush1.bf16.msra.mxu0 %v540_v22 }
  0x8e   : > { %543 = vmatprep.subr.bf16.mxu0 %v542_v23 }
  0x91   : > { %545 = vmatpush1.bf16.msra.mxu0 %v544_v28 }
  0x92   : > { %547 = vmatprep.subr.bf16.mxu0 %v546_v29 }
  0x95   : > { %549 = vmatpush1.bf16.msra.mxu0 %v548_v32 }
  0x98   : > { %345 = vmatmul.mubr.f32.vlgmr.msra.gmra.mrb[0].mxu0 %v202_v33 }
 0x16b   : > { %v346_v42 = vpop.f32.mrb[0].mxu0 }
 0x16c   : > { %v347_v43 = vadd.f32 %v346_v42, %v273_v39  ;;  %v348_v44 = vpop.f32.mrb[1].mxu0 }
 0x16d   : > { %v349_v45 = vadd.f32 %v348_v44, %v277_v40 }
 0x16e   : > { %v351_v46 = vmul.f32 %v347_v43, %v347_v43 }
 0x16f   : > { %v352_v47 = vmul.f32 %v349_v45, %v349_v45 }
 0x170   : > { %v353_v48 = vmul.f32 %v351_v46, %v347_v43 }
 0x171   : > { %v354_v49 = vmul.f32 %v352_v47, %v349_v45 }
 0x172   : > { %v355_v50 = vmul.f32 0.044715, %v353_v48 }
 0x173   : > { %v356_v51 = vmul.f32 0.044715, %v354_v49 }
 0x174   : > { %v357_v52 = vadd.f32 %v355_v50, %v347_v43 }
 0x175   : > { %v358_v53 = vadd.f32 %v356_v51, %v349_v45 }
 0x176   : > { %v359_v54 = vmul.f32 0.7978846, %v357_v52 }
 0x177   : > { %v360_v55 = vmul.f32 0.7978846, %v358_v53 }
 0x178   : > { %609 = vtanh.f32 %v359_v54 }
 0x179   : > { %611 = vtanh.f32 %v360_v55 }
 0x182   : > { %v610_v56 = vpop.eup %609 }
 0x183   : > { %v612_v57 = vpop.eup %611  ;;  %v363_v58 = vadd.f32 1.0, %v610_v56 }
 0x184   : > { %v364_v59 = vadd.f32 1.0, %v612_v57 }
 0x185   : > { %v365_v60 = vmul.f32 0.5, %v363_v58 }
 0x186   : > { %v366_v61 = vmul.f32 0.5, %v364_v59 }
 0x187   : > { %v367_v62 = vmul.f32 %v365_v60, %v347_v43 }
 0x188   : > { %v368_v63 = vmul.f32 %v366_v61, %v349_v45 }
 0x189   : > { %v369_v0 = vadd.f32 %v367_v62, %v202_v33 }
 0x18a   : > { %v370_v1 = vadd.f32 %v368_v63, %v921_v41 }
 0x18b   : > { %371 = vst [vmem:[%s201_s25] sm:$0xff] %v369_v0 }
 0x18c   : > { %372 = vst [vmem:[%s201_s25 + $0x8] sm:$0xff] %v370_v1 }
 0x18d   : > { %684 = shalt.err (!%p681_p7)
}
 0x18e   : > { %s685_s29 = scalar_lea.hbm %s935_s9, 256  ;;  %s689_s22 = scalar_lea.hbm %s982_s3, 512 }
 0x18f   : > { %p686_p9 = scmp.ne.s32.totalorder %s935_s9, %s685_s29  ;;  %p690_p0 = scmp.lt.u32.totalorder %s935_s9, %s982_s3 }
 0x190   : > { %p691_p11 = scmp.lt.u32.totalorder %s689_s22, %s685_s29  ;;  %p693_p4 = scmp.lt.u32.totalorder %s685_s29, %s935_s9 }
 0x191   : > { %p687_p2 = pnand %p686_p9, %p859_p12 }
 0x192   : > { %p692_p1 = por %p691_p11, %p690_p0 }
 0x193   : > { %p688_p5 = pneg %p687_p2 }
 0x194   : > { %p694_p6 = por %p693_p4, %p692_p1 }
 0x196   : > { %p695_p8 = pnand %p694_p6, %p688_p5 }
 0x198   : > { %698 = shalt.err (!%p695_p8)
}
 0x199   : > { %556 = dma.vmem_to_hbm [thread:$0]  (%p859_p12), %s937_s26, 256, %s935_s9, %s374_s16  }
 0x19a PF: > { %s400_s18 = sand.u32 1, %s729_s12   ;;  %p997_p10 = scmp.ne.s32.totalorder %s987_s19, 0 }
 0x19b   : > { %p998_p13 = scmp.ge.s32.totalorder %s741_s15, 2  ;;  %s401_s20 = scalar_lea.sflag [#allocation4], %s400_s18 }
 0x19d   : > { %p567_p3 = pnand %p998_p13, %p997_p10 }
 0x19f   : > { %724 = dma.done.wait (!%p567_p3), %s401_s20, 256  }
 0x1a0   : > { %726 = vsyncadd (!%p567_p3), %s401_s20, 4294967040  ;;  %p17_p7 = scmp.ge.s32.totalorder %s824_s24, 4   ;;  %s999_s12 = smov %s733_s13 }
 0x1a1   : > { %s1000_s13 = smov %s737_s14  ;;  %s1001_s14 = smov %s855_s17 }
 0x1a2   : > { %s1002_s15 = smov %s824_s24  ;;  %19 = sbr.rel (!%p17_p7) target bundleno = 6 (0x6), region = 81 }
 0x1a9   :  { %406 = vsyncpa [#allocation3], 1 }
 0x1aa   :  { %408 = vsyncpa [#allocation3 + $0x1], 1 }
 0x1ab   :  { %409 = vsyncpa [#allocation6], 1 }
 0x1ac   :  { %410 = vsyncpa [#allocation4], 1 }
 0x1ad   :  { %412 = vsyncpa [#allocation4 + $0x1], 1 }

</bundles_post_ra>
